<compile_context>
chip_gen: v7x
topology: tpu7x:2x2x1
jax: 0.10.0
libtpu: 0.0.40
codegen_flags: <defaults>
</compile_context>

<pallas_src>
import functools
import math

import jax
import jax.numpy as jnp
from jax.experimental import pallas as pl
from jax.experimental.pallas import tpu as pltpu


def _round_up(n, m):
    return ((n + m - 1) // m) * m


def _row_align(dtype):
    # sublane packing: f32 -> 8, bf16/f16 -> 16, 8-bit types -> 32
    itemsize = jnp.dtype(dtype).itemsize
    return max(8, 32 // itemsize)


# ----------------------------------------------------------------------------
# Kernel 1: fused multi-head self-attention (per batch element)
# ----------------------------------------------------------------------------
def _mha_kernel(x_ref, wq_ref, wo_ref, o_ref, *, num_heads):
    x = x_ref[0].astype(jnp.float32)                       # (S, d)
    wq = wq_ref[...].astype(jnp.float32)                   # (d, d)
    wo = wo_ref[...].astype(jnp.float32)                   # (d, d)

    # Module quirk: W_q is applied to queries, keys and values -> q == k == v.
    proj = jnp.dot(x, wq, preferred_element_type=jnp.float32)   # (S, d)
    s, d = proj.shape
    dh = d // num_heads
    scale = 1.0 / math.sqrt(dh)

    out = jnp.zeros((s, d), jnp.float32)
    for h in range(num_heads):                             # static, unrolled
        ph = proj[:, h * dh:(h + 1) * dh]                  # (S, dh): q_h=k_h=v_h
        scores = jax.lax.dot_general(
            ph, ph, (((1,), (1,)), ((), ())),
            preferred_element_type=jnp.float32) * scale    # (S, S)
        scores = scores - jnp.max(scores, axis=-1, keepdims=True)
        p = jnp.exp(scores)
        p = p / jnp.sum(p, axis=-1, keepdims=True)         # softmax (dropout=id)
        head = jnp.dot(p, ph, preferred_element_type=jnp.float32)   # (S, dh)
        # concat(heads) @ Wo  ==  sum_h head_h @ Wo[h*dh:(h+1)*dh, :]
        out = out + jnp.dot(head, wo[h * dh:(h + 1) * dh, :],
                            preferred_element_type=jnp.float32)
    o_ref[0] = out.astype(o_ref.dtype)


def multi_head_self_attention(x, wq, wo, *, num_heads,
                              vmem_limit_bytes=48 * 1024 * 1024):
    B, S, d = x.shape
    assert d % num_heads == 0, "num_hiddens must be divisible by num_heads"
    kernel = functools.partial(_mha_kernel, num_heads=num_heads)
    return pl.pallas_call(
        kernel,
        out_shape=jax.ShapeDtypeStruct((B, S, d), x.dtype),
        grid_spec=pltpu.PrefetchScalarGridSpec(
            num_scalar_prefetch=0,
            grid=(B,),
            in_specs=[
                pl.BlockSpec((1, S, d), lambda b: (b, 0, 0)),  # x per batch
                pl.BlockSpec((d, d), lambda b: (0, 0)),        # Wq (resident)
                pl.BlockSpec((d, d), lambda b: (0, 0)),        # Wo (resident)
            ],
            out_specs=pl.BlockSpec((1, S, d), lambda b: (b, 0, 0)),
        ),
        compiler_params=pltpu.CompilerParams(
            dimension_semantics=("parallel",),
            vmem_limit_bytes=vmem_limit_bytes),
    )(x, wq, wo)


# ----------------------------------------------------------------------------
# Kernel 2: fused AddNorm1 -> PositionWiseFFN -> AddNorm2 (row-tiled)
# ----------------------------------------------------------------------------
def _addnorm_ffn_addnorm_kernel(x_ref, attn_ref, g1_ref, be1_ref,
                                w1_ref, b1_ref, w2_ref, b2_ref,
                                g2_ref, be2_ref, o_ref, *, eps):
    x = x_ref[...].astype(jnp.float32)
    a = attn_ref[...].astype(jnp.float32)

    # AddNorm 1: LayerNorm(dropout(attn) + x), dropout = identity (eval mode)
    y = x + a
    mu = jnp.mean(y, axis=-1, keepdims=True)
    var = jnp.mean(jnp.square(y - mu), axis=-1, keepdims=True)
    yn = (y - mu) * jax.lax.rsqrt(var + eps)
    yn = yn * g1_ref[...] + be1_ref[...]                  # Y

    # Position-wise FFN: relu(Y @ W1 + b1) @ W2 + b2 (hidden dim is lane-padded)
    h = jnp.dot(yn.astype(w1_ref.dtype), w1_ref[...],
                preferred_element_type=jnp.float32)
    h = jnp.maximum(h + b1_ref[...], 0.0)
    f = jnp.dot(h.astype(w2_ref.dtype), w2_ref[...],
                preferred_element_type=jnp.float32)
    f = f + b2_ref[...]

    # AddNorm 2: LayerNorm(FFN(Y) + Y)
    z = f + yn
    mu2 = jnp.mean(z, axis=-1, keepdims=True)
    var2 = jnp.mean(jnp.square(z - mu2), axis=-1, keepdims=True)
    zn = (z - mu2) * jax.lax.rsqrt(var2 + eps)
    zn = zn * g2_ref[...] + be2_ref[...]

    o_ref[...] = zn.astype(o_ref.dtype)


def addnorm_ffn_addnorm(x, attn, gamma1, beta1, w1, b1, w2, b2, gamma2, beta2,
                        *, tm=256, eps=1e-5,
                        vmem_limit_bytes=48 * 1024 * 1024):
    orig_shape = x.shape
    d = orig_shape[-1]
    d_h = w1.shape[1]
    assert w1.shape[0] == d and w2.shape == (d_h, d)

    x2d = x.reshape(-1, d)
    a2d = attn.reshape(-1, d)
    M = x2d.shape[0]

    # Large, MXU-friendly row tile, clamped to the problem and aligned to the
    # dtype's sublane packing; grid via cdiv + zero padding (no M % tm assert).
    align = _row_align(x.dtype)
    tm_eff = max(align, min(_round_up(tm, align), _round_up(M, align)))
    n_rows = pl.cdiv(M, tm_eff)
    M_pad = n_rows * tm_eff
    if M_pad != M:
        x2d = jnp.pad(x2d, ((0, M_pad - M), (0, 0)))
        a2d = jnp.pad(a2d, ((0, M_pad - M), (0, 0)))

    # Lane-dense FFN hidden dim: zero-pad to a multiple of 128.
    d_h_pad = _round_up(d_h, 128)
    if d_h_pad != d_h:
        w1 = jnp.pad(w1, ((0, 0), (0, d_h_pad - d_h)))
        b1 = jnp.pad(b1, (0, d_h_pad - d_h))
        w2 = jnp.pad(w2, ((0, d_h_pad - d_h), (0, 0)))

    g1 = gamma1.reshape(1, d)
    be1 = beta1.reshape(1, d)
    g2 = gamma2.reshape(1, d)
    be2 = beta2.reshape(1, d)
    b1_2d = b1.reshape(1, d_h_pad)
    b2_2d = b2.reshape(1, d)

    kernel = functools.partial(_addnorm_ffn_addnorm_kernel, eps=eps)
    const = lambda i: (0, 0)                     # weights resident, never re-indexed

    out = pl.pallas_call(
        kernel,
        out_shape=jax.ShapeDtypeStruct((M_pad, d), x.dtype),
        grid_spec=pltpu.PrefetchScalarGridSpec(
            num_scalar_prefetch=0,
            grid=(n_rows,),
            in_specs=[
                pl.BlockSpec((tm_eff, d), lambda i: (i, 0)),   # x rows
                pl.BlockSpec((tm_eff, d), lambda i: (i, 0)),   # attn rows
                pl.BlockSpec((1, d), const),                   # gamma1
                pl.BlockSpec((1, d), const),                   # beta1
                pl.BlockSpec((d, d_h_pad), const),             # W1
                pl.BlockSpec((1, d_h_pad), const),             # b1
                pl.BlockSpec((d_h_pad, d), const),             # W2
                pl.BlockSpec((1, d), const),                   # b2
                pl.BlockSpec((1, d), const),                   # gamma2
                pl.BlockSpec((1, d), const),                   # beta2
            ],
            out_specs=pl.BlockSpec((tm_eff, d), lambda i: (i, 0)),
        ),
        compiler_params=pltpu.CompilerParams(
            dimension_semantics=("parallel",),
            vmem_limit_bytes=vmem_limit_bytes),
    )(x2d, a2d, g1, be1, w1, b1_2d, w2, b2_2d, g2, be2)

    return out[:M].reshape(orig_shape)


# ----------------------------------------------------------------------------
# Full EncoderBlk forward
# ----------------------------------------------------------------------------
def encoder_blk_forward(x, params, *, num_heads, tm=256, eps=1e-5):
    attn = multi_head_self_attention(x, params["wq"], params["wo"],
                                     num_heads=num_heads)
    return addnorm_ffn_addnorm(
        x, attn,
        params["gamma1"], params["beta1"],
        params["w1"], params["b1"], params["w2"], params["b2"],
        params["gamma2"], params["beta2"],
        tm=tm, eps=eps)


# ----------------------------------------------------------------------------
# Pure-JAX reference (matches the PyTorch module's forward, eval mode)
# ----------------------------------------------------------------------------
def _reference(x, p, num_heads, eps=1e-5):
    B, S, d = x.shape
    dh = d // num_heads
    proj = x @ p["wq"]                                # W_q used for q, k and v

    def split(t):
        return t.reshape(B, S, num_heads, dh).transpose(0, 2, 1, 3).reshape(
            B * num_heads, S, dh)

    q = split(proj)
    k = split(proj)
    v = split(proj)
    scores = jnp.einsum("bqd,bkd->bqk", q, k) / math.sqrt(dh)
    w = jax.nn.softmax(scores, axis=-1)
    o = jnp.einsum("bqk,bkd->bqd", w, v)
    o = o.reshape(B, num_heads, S, dh).transpose(0, 2, 1, 3).reshape(B, S, d)
    attn = o @ p["wo"]

    def ln(t, g, b):
        mu = t.mean(-1, keepdims=True)
        var = ((t - mu) ** 2).mean(-1, keepdims=True)
        return (t - mu) / jnp.sqrt(var + eps) * g + b

    y = ln(x + attn, p["gamma1"], p["beta1"])
    f = jnp.maximum(y @ p["w1"] + p["b1"], 0.0) @ p["w2"] + p["b2"]
    return ln(y + f, p["gamma2"], p["beta2"])


if __name__ == "__main__":
    # Small shapes consistent with EncoderBlk: x (batch, seq, num_hiddens)
    batch, seq = 2, 8
    num_hiddens, num_heads = 32, 4
    ffn_num_input, ffn_num_hiddens = 32, 64      # FFN output dim == num_hiddens

    key = jax.random.PRNGKey(0)
    keys = jax.random.split(key, 10)

    x = jax.random.normal(keys[0], (batch, seq, num_hiddens), dtype=jnp.float32)

    def _linear_w(k, fan_in, shape):
        bound = 1.0 / math.sqrt(fan_in)
        return jax.random.uniform(k, shape, minval=-bound, maxval=bound,
                                  dtype=jnp.float32)

    params = {
        # attention projections (bias=False; W_k / W_v are unused by the
        # module's own forward, so only W_q and W_o are needed)
        "wq": _linear_w(keys[1], num_hiddens, (num_hiddens, num_hiddens)),
        "wo": _linear_w(keys[2], num_hiddens, (num_hiddens, num_hiddens)),
        # FFN (stored transposed: (in, out))
        "w1": _linear_w(keys[3], ffn_num_input, (ffn_num_input, ffn_num_hiddens)),
        "b1": _linear_w(keys[4], ffn_num_input, (ffn_num_hiddens,)),
        "w2": _linear_w(keys[5], ffn_num_hiddens, (ffn_num_hiddens, num_hiddens)),
        "b2": _linear_w(keys[6], ffn_num_hiddens, (num_hiddens,)),
        # LayerNorm affine params (random + PyTorch-default to cover both)
        "gamma1": 1.0 + 0.1 * jax.random.normal(keys[7], (num_hiddens,),
                                                dtype=jnp.float32),
        "beta1": 0.1 * jax.random.normal(keys[8], (num_hiddens,),
                                         dtype=jnp.float32),
        "gamma2": jnp.ones((num_hiddens,), dtype=jnp.float32),
        "beta2": jnp.zeros((num_hiddens,), dtype=jnp.float32),
    }

    y = encoder_blk_forward(x, params, num_heads=num_heads)
    y = jax.block_until_ready(y)

    ref = _reference(x, params, num_heads)
    assert y.shape == (batch, seq, num_hiddens)
    max_err = float(jnp.max(jnp.abs(y - ref)))
    assert jnp.allclose(y, ref, atol=1e-4, rtol=1e-4), (
        f"mismatch vs reference, max abs err = {max_err}")

    print("KERNEL_OK")
</pallas_src>

<mosaic_0001>
module attributes {stable_mosaic.version = 11 : i64} {
  func.func @_mha_kernel(%arg0: i32, %arg1: memref<1x8x32xf32, #tpu.memory_space<vmem>>, %arg2: memref<32x32xf32, #tpu.memory_space<vmem>>, %arg3: memref<32x32xf32, #tpu.memory_space<vmem>>, %arg4: memref<1x8x32xf32, #tpu.memory_space<vmem>>) attributes {dimension_semantics = [#tpu.dimension_semantics<parallel>], iteration_bounds = array<i64: 2>, scalar_prefetch = 0 : i64, scratch_operands = 0 : i64, tpu.core_type = #tpu.core_type<tc>, window_params = [{transform_indices = @transform_0, window_bounds = array<i64: 1, 8, 32>}, {pipeline_mode = #tpu.pipeline_mode<synchronous>, transform_indices = @transform_1, window_bounds = array<i64: 32, 32>}, {pipeline_mode = #tpu.pipeline_mode<synchronous>, transform_indices = @transform_2, window_bounds = array<i64: 32, 32>}, {transform_indices = @transform_3, window_bounds = array<i64: 1, 8, 32>}]} {
    %c0 = arith.constant 0 : index
    %c0_0 = arith.constant 0 : index
    %c0_1 = arith.constant 0 : index
    %0 = vector.load %arg1[%c0, %c0_0, %c0_1] : memref<1x8x32xf32, #tpu.memory_space<vmem>>, vector<1x8x32xf32>
    %1 = vector.shape_cast %0 : vector<1x8x32xf32> to vector<8x32xf32>
    %c0_2 = arith.constant 0 : index
    %c0_3 = arith.constant 0 : index
    %2 = vector.load %arg2[%c0_2, %c0_3] : memref<32x32xf32, #tpu.memory_space<vmem>>, vector<32x32xf32>
    %c0_4 = arith.constant 0 : index
    %c0_5 = arith.constant 0 : index
    %3 = vector.load %arg3[%c0_4, %c0_5] : memref<32x32xf32, #tpu.memory_space<vmem>>, vector<32x32xf32>
    %cst = arith.constant dense<0.000000e+00> : vector<8x32xf32>
    %4 = tpu.matmul %1, %2, %cst {dimension_numbers = #tpu.dot_dimension_numbers<[1], [0], [0], [1], [0, 0, 1, 1], [], []>} : vector<8x32xf32>, vector<32x32xf32>, vector<8x32xf32> -> vector<8x32xf32>
    %cst_6 = arith.constant 0.000000e+00 : f32
    %5 = vector.broadcast %cst_6 : f32 to vector<8x32xf32>
    %6 = vector.extract_strided_slice %4 {offsets = [0, 0], sizes = [8, 8], strides = [1, 1]} : vector<8x32xf32> to vector<8x8xf32>
    %cst_7 = arith.constant dense<0.000000e+00> : vector<8x8xf32>
    %7 = tpu.matmul %6, %6, %cst_7 {dimension_numbers = #tpu.dot_dimension_numbers<[1], [1], [0], [0], [0, 0, 1, 0], [], []>} : vector<8x8xf32>, vector<8x8xf32>, vector<8x8xf32> -> vector<8x8xf32>
    %cst_8 = arith.constant 0.353553385 : f32
    %8 = vector.broadcast %cst_8 : f32 to vector<8x8xf32>
    %9 = arith.mulf %7, %8 : vector<8x8xf32>
    %cst_9 = arith.constant dense<0xFF800000> : vector<8xf32>
    %10 = vector.multi_reduction <maximumf>, %9, %cst_9 [1] : vector<8x8xf32> to vector<8xf32>
    %11 = vector.shape_cast %10 : vector<8xf32> to vector<8x1xf32>
    %12 = vector.broadcast %11 : vector<8x1xf32> to vector<8x8xf32>
    %13 = arith.subf %9, %12 : vector<8x8xf32>
    %14 = math.exp %13 : vector<8x8xf32>
    %cst_10 = arith.constant dense<0.000000e+00> : vector<8xf32>
    %15 = vector.multi_reduction <add>, %14, %cst_10 [1] : vector<8x8xf32> to vector<8xf32>
    %16 = vector.shape_cast %15 : vector<8xf32> to vector<8x1xf32>
    %17 = vector.broadcast %16 : vector<8x1xf32> to vector<8x8xf32>
    %18 = arith.divf %14, %17 : vector<8x8xf32>
    %cst_11 = arith.constant dense<0.000000e+00> : vector<8x8xf32>
    %19 = tpu.matmul %18, %6, %cst_11 {dimension_numbers = #tpu.dot_dimension_numbers<[1], [0], [0], [1], [0, 0, 1, 1], [], []>} : vector<8x8xf32>, vector<8x8xf32>, vector<8x8xf32> -> vector<8x8xf32>
    %20 = vector.extract_strided_slice %3 {offsets = [0, 0], sizes = [8, 32], strides = [1, 1]} : vector<32x32xf32> to vector<8x32xf32>
    %cst_12 = arith.constant dense<0.000000e+00> : vector<8x32xf32>
    %21 = tpu.matmul %19, %20, %cst_12 {dimension_numbers = #tpu.dot_dimension_numbers<[1], [0], [0], [1], [0, 0, 1, 1], [], []>} : vector<8x8xf32>, vector<8x32xf32>, vector<8x32xf32> -> vector<8x32xf32>
    %22 = arith.addf %5, %21 : vector<8x32xf32>
    %23 = vector.extract_strided_slice %4 {offsets = [0, 8], sizes = [8, 8], strides = [1, 1]} : vector<8x32xf32> to vector<8x8xf32>
    %cst_13 = arith.constant dense<0.000000e+00> : vector<8x8xf32>
    %24 = tpu.matmul %23, %23, %cst_13 {dimension_numbers = #tpu.dot_dimension_numbers<[1], [1], [0], [0], [0, 0, 1, 0], [], []>} : vector<8x8xf32>, vector<8x8xf32>, vector<8x8xf32> -> vector<8x8xf32>
    %cst_14 = arith.constant 0.353553385 : f32
    %25 = vector.broadcast %cst_14 : f32 to vector<8x8xf32>
    %26 = arith.mulf %24, %25 : vector<8x8xf32>
    %cst_15 = arith.constant dense<0xFF800000> : vector<8xf32>
    %27 = vector.multi_reduction <maximumf>, %26, %cst_15 [1] : vector<8x8xf32> to vector<8xf32>
    %28 = vector.shape_cast %27 : vector<8xf32> to vector<8x1xf32>
    %29 = vector.broadcast %28 : vector<8x1xf32> to vector<8x8xf32>
    %30 = arith.subf %26, %29 : vector<8x8xf32>
    %31 = math.exp %30 : vector<8x8xf32>
    %cst_16 = arith.constant dense<0.000000e+00> : vector<8xf32>
    %32 = vector.multi_reduction <add>, %31, %cst_16 [1] : vector<8x8xf32> to vector<8xf32>
    %33 = vector.shape_cast %32 : vector<8xf32> to vector<8x1xf32>
    %34 = vector.broadcast %33 : vector<8x1xf32> to vector<8x8xf32>
    %35 = arith.divf %31, %34 : vector<8x8xf32>
    %cst_17 = arith.constant dense<0.000000e+00> : vector<8x8xf32>
    %36 = tpu.matmul %35, %23, %cst_17 {dimension_numbers = #tpu.dot_dimension_numbers<[1], [0], [0], [1], [0, 0, 1, 1], [], []>} : vector<8x8xf32>, vector<8x8xf32>, vector<8x8xf32> -> vector<8x8xf32>
    %37 = vector.extract_strided_slice %3 {offsets = [8, 0], sizes = [8, 32], strides = [1, 1]} : vector<32x32xf32> to vector<8x32xf32>
    %cst_18 = arith.constant dense<0.000000e+00> : vector<8x32xf32>
    %38 = tpu.matmul %36, %37, %cst_18 {dimension_numbers = #tpu.dot_dimension_numbers<[1], [0], [0], [1], [0, 0, 1, 1], [], []>} : vector<8x8xf32>, vector<8x32xf32>, vector<8x32xf32> -> vector<8x32xf32>
    %39 = arith.addf %22, %38 : vector<8x32xf32>
    %40 = vector.extract_strided_slice %4 {offsets = [0, 16], sizes = [8, 8], strides = [1, 1]} : vector<8x32xf32> to vector<8x8xf32>
    %cst_19 = arith.constant dense<0.000000e+00> : vector<8x8xf32>
    %41 = tpu.matmul %40, %40, %cst_19 {dimension_numbers = #tpu.dot_dimension_numbers<[1], [1], [0], [0], [0, 0, 1, 0], [], []>} : vector<8x8xf32>, vector<8x8xf32>, vector<8x8xf32> -> vector<8x8xf32>
    %cst_20 = arith.constant 0.353553385 : f32
    %42 = vector.broadcast %cst_20 : f32 to vector<8x8xf32>
    %43 = arith.mulf %41, %42 : vector<8x8xf32>
    %cst_21 = arith.constant dense<0xFF800000> : vector<8xf32>
    %44 = vector.multi_reduction <maximumf>, %43, %cst_21 [1] : vector<8x8xf32> to vector<8xf32>
    %45 = vector.shape_cast %44 : vector<8xf32> to vector<8x1xf32>
    %46 = vector.broadcast %45 : vector<8x1xf32> to vector<8x8xf32>
    %47 = arith.subf %43, %46 : vector<8x8xf32>
    %48 = math.exp %47 : vector<8x8xf32>
    %cst_22 = arith.constant dense<0.000000e+00> : vector<8xf32>
    %49 = vector.multi_reduction <add>, %48, %cst_22 [1] : vector<8x8xf32> to vector<8xf32>
    %50 = vector.shape_cast %49 : vector<8xf32> to vector<8x1xf32>
    %51 = vector.broadcast %50 : vector<8x1xf32> to vector<8x8xf32>
    %52 = arith.divf %48, %51 : vector<8x8xf32>
    %cst_23 = arith.constant dense<0.000000e+00> : vector<8x8xf32>
    %53 = tpu.matmul %52, %40, %cst_23 {dimension_numbers = #tpu.dot_dimension_numbers<[1], [0], [0], [1], [0, 0, 1, 1], [], []>} : vector<8x8xf32>, vector<8x8xf32>, vector<8x8xf32> -> vector<8x8xf32>
    %54 = vector.extract_strided_slice %3 {offsets = [16, 0], sizes = [8, 32], strides = [1, 1]} : vector<32x32xf32> to vector<8x32xf32>
    %cst_24 = arith.constant dense<0.000000e+00> : vector<8x32xf32>
    %55 = tpu.matmul %53, %54, %cst_24 {dimension_numbers = #tpu.dot_dimension_numbers<[1], [0], [0], [1], [0, 0, 1, 1], [], []>} : vector<8x8xf32>, vector<8x32xf32>, vector<8x32xf32> -> vector<8x32xf32>
    %56 = arith.addf %39, %55 : vector<8x32xf32>
    %57 = vector.extract_strided_slice %4 {offsets = [0, 24], sizes = [8, 8], strides = [1, 1]} : vector<8x32xf32> to vector<8x8xf32>
    %cst_25 = arith.constant dense<0.000000e+00> : vector<8x8xf32>
    %58 = tpu.matmul %57, %57, %cst_25 {dimension_numbers = #tpu.dot_dimension_numbers<[1], [1], [0], [0], [0, 0, 1, 0], [], []>} : vector<8x8xf32>, vector<8x8xf32>, vector<8x8xf32> -> vector<8x8xf32>
    %cst_26 = arith.constant 0.353553385 : f32
    %59 = vector.broadcast %cst_26 : f32 to vector<8x8xf32>
    %60 = arith.mulf %58, %59 : vector<8x8xf32>
    %cst_27 = arith.constant dense<0xFF800000> : vector<8xf32>
    %61 = vector.multi_reduction <maximumf>, %60, %cst_27 [1] : vector<8x8xf32> to vector<8xf32>
    %62 = vector.shape_cast %61 : vector<8xf32> to vector<8x1xf32>
    %63 = vector.broadcast %62 : vector<8x1xf32> to vector<8x8xf32>
    %64 = arith.subf %60, %63 : vector<8x8xf32>
    %65 = math.exp %64 : vector<8x8xf32>
    %cst_28 = arith.constant dense<0.000000e+00> : vector<8xf32>
    %66 = vector.multi_reduction <add>, %65, %cst_28 [1] : vector<8x8xf32> to vector<8xf32>
    %67 = vector.shape_cast %66 : vector<8xf32> to vector<8x1xf32>
    %68 = vector.broadcast %67 : vector<8x1xf32> to vector<8x8xf32>
    %69 = arith.divf %65, %68 : vector<8x8xf32>
    %cst_29 = arith.constant dense<0.000000e+00> : vector<8x8xf32>
    %70 = tpu.matmul %69, %57, %cst_29 {dimension_numbers = #tpu.dot_dimension_numbers<[1], [0], [0], [1], [0, 0, 1, 1], [], []>} : vector<8x8xf32>, vector<8x8xf32>, vector<8x8xf32> -> vector<8x8xf32>
    %71 = vector.extract_strided_slice %3 {offsets = [24, 0], sizes = [8, 32], strides = [1, 1]} : vector<32x32xf32> to vector<8x32xf32>
    %cst_30 = arith.constant dense<0.000000e+00> : vector<8x32xf32>
    %72 = tpu.matmul %70, %71, %cst_30 {dimension_numbers = #tpu.dot_dimension_numbers<[1], [0], [0], [1], [0, 0, 1, 1], [], []>} : vector<8x8xf32>, vector<8x32xf32>, vector<8x32xf32> -> vector<8x32xf32>
    %73 = arith.addf %56, %72 : vector<8x32xf32>
    %c0_31 = arith.constant 0 : index
    %c0_32 = arith.constant 0 : index
    %c0_33 = arith.constant 0 : index
    %74 = vector.load %arg4[%c0_31, %c0_32, %c0_33] : memref<1x8x32xf32, #tpu.memory_space<vmem>>, vector<1x8x32xf32>
    %75 = vector.shape_cast %74 : vector<1x8x32xf32> to vector<8x32xf32>
    %76 = vector.shape_cast %73 : vector<8x32xf32> to vector<1x8x32xf32>
    tpu.vector_store %arg4[%c0_31, %c0_32, %c0_33], %76 {strides = array<i32>} : memref<1x8x32xf32, #tpu.memory_space<vmem>>, vector<1x8x32xf32>,
    return
  }
  func.func @transform_0(%arg0: i32) -> (i32, i32, i32) {
    %c0_i32 = arith.constant 0 : i32
    %c0_i32_0 = arith.constant 0 : i32
    %c0_i32_1 = arith.constant 0 : i32
    return %arg0, %c0_i32, %c0_i32_0 : i32, i32, i32
  }
  func.func @transform_1(%arg0: i32) -> (i32, i32) {
    %c0_i32 = arith.constant 0 : i32
    %c0_i32_0 = arith.constant 0 : i32
    %c0_i32_1 = arith.constant 0 : i32
    return %c0_i32, %c0_i32_0 : i32, i32
  }
  func.func @transform_2(%arg0: i32) -> (i32, i32) {
    %c0_i32 = arith.constant 0 : i32
    %c0_i32_0 = arith.constant 0 : i32
    %c0_i32_1 = arith.constant 0 : i32
    return %c0_i32, %c0_i32_0 : i32, i32
  }
  func.func @transform_3(%arg0: i32) -> (i32, i32, i32) {
    %c0_i32 = arith.constant 0 : i32
    %c0_i32_0 = arith.constant 0 : i32
    %c0_i32_1 = arith.constant 0 : i32
    return %arg0, %c0_i32, %c0_i32_0 : i32, i32, i32
  }
}

</mosaic_0001>

<bundles_post_ra>
// kernel: tpu_custom_call.1
= control target key start
LH: loop header
LB: loop body
LE: loop exit
PB: predicated region body
PF: predicated region fallthrough
CT: control target
= control target key end

     0   :  { %8 = vsyncpa [#allocation3], 0  ;;  %s2066_s0 = inlined_call_operand.hbm [shape: f32[2,8,32], index: 0, kind: input, shape index: {}]   ;;  %s2067_s1 = inlined_call_operand.hbm [shape: f32[32,32], index: 1, kind: input, shape index: {}]   ;;  %s2068_s2 = inlined_call_operand.hbm [shape: f32[32,32], index: 2, kind: input, shape index: {}]   ;;  %s2069_s3 = inlined_call_operand.hbm [shape: f32[2,8,32], index: 3, kind: output, shape index: {}]  }
   0x1   :  { %10 = vsyncpa [#allocation3 + $0x1], 0 }
   0x2   :  { %11 = vsyncpa [#allocation6], 0 }
   0x3   :  { %12 = vsyncpa [#allocation4], 0 }
   0x4   :  { %14 = vsyncpa [#allocation4 + $0x1], 0  ;;  %s1761_s12 = smov 0   ;;  %s1763_s13 = smov 0  }
   0x5   :  { %s1765_s14 = smov 0   ;;  %s1767_s15 = smov 0  }
   0x6 LB: > { %s1782_s16 = sadd.s32 4294967295, %s1727_s15   ;;  %s1335_s17 = sadd.s32 4294967294, %s1727_s15   ;;  %s1727_s15 = sphi %s1767_s15, %s2089_s15   ;;  %s1723_s14 = sphi %s1765_s14, %s2088_s14   ;;  %s1719_s13 = sphi %s1763_s13, %s2087_s13   ;;  %s1715_s12 = sphi %s1761_s12, %s2086_s12  }
   0x7   : > { %p40_p0 = scmp.ne.s32.totalorder %s1719_s13, %s1715_s12  ;;  %p2070_p1 = scmp.eq.s32.totalorder %s1782_s16, 0 }
   0x8   : > { %p112_p3 = scmp.eq.s32.totalorder %s1335_s17, 1  ;;  %p1336_p5 = scmp.ge.s32.totalorder %s1727_s15, 1 }
   0x9   : > { %p1791_p4 = por %p2070_p1, %p40_p0  ;;  %p119_p7 = scmp.lt.s32.totalorder %s1727_s15, 3 }
   0xa   : > { %p1796_p6 = por %p112_p3, %p40_p0  ;;  %s1729_s21 = smov [#allocation5]  }
   0xb   : > { %s2073_s18 = scalar_select %p1791_p4, 1, 0 }
   0xc   : > { %s2074_s19 = scalar_select %p1796_p6, 1, 0 }
   0xd   : > { %p1801_p8 = pnand %p1336_p5, %p119_p7  ;;  %s131_s22 = sshll.u32 %s1729_s21, 4  ;;  %s1805_s22 = int_to_ptr.vmem [resolvable:$true] %s131_s22 }
   0xe   : > { %s1730_s24 = smov [#allocation7]   ;;  %s1571_s28 = scalar_lea.hbm %s2067_s1, 512 }
   0xf   : > { %p1492_p9 = pneg %p1801_p8  ;;  %s144_s25 = sshll.u32 %s1730_s24, 4  ;;  %s1816_s25 = int_to_ptr.vmem [resolvable:$true] %s144_s25 }
  0x10   : > { %p1572_p12 = scmp.ne.s32.totalorder %s2067_s1, %s1571_s28  ;;  %p1578_p5 = scmp.lt.u32.totalorder %s1571_s28, %s2067_s1 }
  0x11   : > { %p1812_p11 = pnand %p1492_p9, %p2070_p1 }
  0x13   : > { %p1573_p13 = pneg %p1812_p11 }
  0x15   : > { %p1574_p0 = pnand %p1573_p13, %p1572_p12 }
  0x17   : > { %p1575_p3 = pneg %p1574_p0 }
  0x19   : > { %p1580_p7 = pnand %p1578_p5, %p1575_p3 }
  0x1b   : > { %1583 = shalt.err (!%p1580_p7)
}
  0x1c   : > { %s1584_s6 = scalar_lea.vmem %s1805_s22, 512  ;;  %p1592_p2 = scmp.lt.s32.totalorder %s1805_s22, %s1805_s22 }
  0x1d   : > { %p1585_p9 = scmp.ne.s32.totalorder %s1805_s22, %s1584_s6  ;;  %p1593_p12 = scmp.lt.s32.totalorder %s1584_s6, %s1584_s6 }
  0x1f   : > { %p1587_p10 = pnand %p1585_p9, %p1573_p13  ;;  %p1594_p0 = por %p1593_p12, %p1592_p2 }
  0x21   : > { %p1588_p1 = pneg %p1587_p10 }
  0x23   : > { %p1595_p6 = pnand %p1594_p0, %p1588_p1 }
  0x25   : > { %1598 = shalt.err (!%p1595_p6)
}
  0x26   : > { %s1731_s7 = smov 128   ;;  %s1732_s8 = smov 8  }
  0x27   : > { %1495 = dma.hbm_to_vmem [thread:$0]  (!%p1812_p11), %s2067_s1, 512, %s1805_s22, [#allocation6], %s1731_s7, %s1731_s7, %s1732_s8  }
  0x28   : > { %s1599_s21 = scalar_lea.hbm %s2068_s2, 512 }
  0x29   : > { %p1600_p2 = scmp.ne.s32.totalorder %s2068_s2, %s1599_s21  ;;  %p1606_p10 = scmp.lt.u32.totalorder %s1599_s21, %s2068_s2 }
  0x2b   : > { %p1602_p1 = pnand %p1600_p2, %p1573_p13 }
  0x2d   : > { %p1603_p6 = pneg %p1602_p1 }
  0x2f   : > { %p1608_p3 = pnand %p1606_p10, %p1603_p6 }
  0x31   : > { %1611 = shalt.err (!%p1608_p3)
}
  0x32   : > { %s1612_s22 = scalar_lea.vmem %s1816_s25, 512  ;;  %p1620_p12 = scmp.lt.s32.totalorder %s1816_s25, %s1816_s25 }
  0x33   : > { %p1613_p5 = scmp.ne.s32.totalorder %s1816_s25, %s1612_s22  ;;  %p1621_p0 = scmp.lt.s32.totalorder %s1612_s22, %s1612_s22 }
  0x35   : > { %p1615_p7 = pnand %p1613_p5, %p1573_p13  ;;  %p1622_p2 = por %p1621_p0, %p1620_p12 }
  0x37   : > { %p1616_p9 = pneg %p1615_p7 }
  0x39   : > { %p1623_p1 = pnand %p1622_p2, %p1616_p9 }
  0x3b   : > { %1626 = shalt.err (!%p1623_p1)
}
  0x3c   : > { %1498 = dma.hbm_to_vmem [thread:$0]  (!%p1812_p11), %s2068_s2, 512, %s1816_s25, [#allocation6], %s1731_s7, %s1731_s7, %s1732_s8  }
  0x3d   : > { %s1871_s4 = sadd.s32 1, %s1727_s15   ;;  %s27_s23 = sadd.s32 1, %s1723_s14 }
  0x3e   : > { %s24_s5 = ssub.s32 %s1727_s15, %s1871_s4  ;;  %p34_p13 = scmp.ne.s32.totalorder %s1723_s14, %s1719_s13 }
  0x3f   : > { %p25_p6 = scmp.eq.s32.totalorder %s24_s5, 0  ;;  %p35_p10 = scmp.eq.s32.totalorder %s1727_s15, 0 }
  0x40   : > { %p2077_p3 = scmp.eq.s32.totalorder %s1782_s16, 1  ;;  %p1509_p7 = scmp.lt.s32.totalorder %s1727_s15, 2 }
  0x41   : > { %s1887_s9 = scalar_select %p25_p6, %s1723_s14, %s27_s23  }
  0x42   : > { %p1881_p5 = por %p2077_p3, %p34_p13  ;;  %p36_p9 = por %p35_p10, %p34_p13 }
  0x43   : > { %s158_s10 = sand.u32 1, %s1723_s14   ;;  %s1341_s25 = sshll.u32 %s1727_s15, 7 }
  0x44   : > { %s2078_s6 = scalar_select %p1881_p5, 1, 0 }
  0x45   : > { %s1340_s11 = sshll.u32 %s158_s10, 3  ;;  %s1894_s17 = scalar_lea.hbm %s2066_s0, %s1341_s25 }
  0x46   : > { %s162_s21 = scalar_lea.vmem [#allocation2], %s1340_s11  ;;  %p1898_p11 = pnand %p1509_p7, %p36_p9 }
  0x47   : > { %s169_s24 = sshll.u32 %s162_s21, 4  ;;  %s159_s27 = scalar_lea.sflag [#allocation3], %s158_s10  ;;  %s1896_s24 = int_to_ptr.vmem [resolvable:$true] %s169_s24 }
  0x48   : > { %s1627_s28 = scalar_lea.hbm %s1894_s17, 128  ;;  %p1629_p0 = pneg %p1898_p11 }
  0x49   : > { %p1628_p12 = scmp.ne.s32.totalorder %s1894_s17, %s1627_s28  ;;  %s1632_s30 = scalar_lea.hbm %s2066_s0, 256 }
  0x4a   : > { %p1633_p13 = scmp.lt.u32.totalorder %s1894_s17, %s2066_s0  ;;  %p1634_p6 = scmp.lt.u32.totalorder %s1632_s30, %s1627_s28 }
  0x4b   : > { %p1630_p2 = pnand %p1629_p0, %p1628_p12  ;;  %p1636_p3 = scmp.lt.u32.totalorder %s1627_s28, %s1894_s17 }
  0x4c   : > { %p1635_p10 = por %p1634_p6, %p1633_p13 }
  0x4d   : > { %p1631_p1 = pneg %p1630_p2 }
  0x4e   : > { %p1637_p7 = por %p1636_p3, %p1635_p10 }
  0x50   : > { %p1638_p9 = pnand %p1637_p7, %p1631_p1 }
  0x52   : > { %1641 = shalt.err (!%p1638_p9)
}
  0x53   : > { %s1642_s10 = scalar_lea.vmem %s1896_s24, 128  ;;  %s1733_s11 = smov [#allocation2]  }
  0x54   : > { %p1643_p12 = scmp.ne.s32.totalorder %s1896_s24, %s1642_s10  ;;  %s1647_s25 = sshll.u32 %s1733_s11, 4  ;;  %s1648_s25 = int_to_ptr.vmem [resolvable:$false] %s1647_s25 }
  0x55   : > { %s1649_s7 = scalar_lea.vmem %s1648_s25, 256  ;;  %p1650_p4 = scmp.lt.s32.totalorder %s1896_s24, %s1648_s25 }
  0x56   : > { %p1645_p2 = pnand %p1643_p12, %p1629_p0  ;;  %p1651_p13 = scmp.lt.s32.totalorder %s1649_s7, %s1642_s10 }
  0x58   : > { %p1646_p5 = pneg %p1645_p2  ;;  %p1652_p6 = por %p1651_p13, %p1650_p4 }
  0x5a   : > { %p1653_p10 = pnand %p1652_p6, %p1646_p5 }
  0x5c   : > { %1656 = shalt.err (!%p1653_p10)
}
  0x5d   : > { %1502 = dma.hbm_to_vmem [thread:$0]  (!%p1898_p11), %s1894_s17, 128, %s1896_s24, %s159_s27  }
  0x5e   : > { %178 = sbr.rel (%p1801_p8) target bundleno = 2892 (0xb4c), region = 32  ;;  %s1930_s8 = sand.u32 (!%p1801_p8), 1, %s1719_s13  }
  0x5f   : > { %s1343_s21 = sshll.u32 (!%p1801_p8), %s1930_s8, 3  ;;  %s181_s28 = scalar_lea.sflag (!%p1801_p8), [#allocation3], %s1930_s8 }
  0x60   : > { %s184_s22 = scalar_lea.vmem (!%p1801_p8), [#allocation2], %s1343_s21  ;;  %p2080_p4 = scmp.ne.s32.totalorder (!%p1801_p8), %s2073_s18, 0 }
  0x65   : > { %1702 = dma.done.wait (%p2080_p4), %s181_s28, 128  }
  0x66   : > { %1704 = vsyncadd (%p2080_p4), %s181_s28, 4294967168  ;;  %p2081_p5 = scmp.eq.s32.totalorder %s1782_s16, 0 }
  0x68   : > { %1706 = dma.done.wait (%p2081_p5), [#allocation6], 1024   ;;  %p2082_p8 = pmov %p2081_p5 }
  0x69   : > { %v1734_v0 = vmov 0.0|0.0   ;;  %vm1735_vm0 = vmmov 0   ;;  %v1736_v1 = vmov 0.0   ;;  %v216_v2 = vld [vmem:[#allocation5] sm:$0xff]  ;;  %v217_v3 = vld [vmem:[#allocation5 + $0x8] sm:$0xff]  ;;  %v218_v4 = vld [vmem:[#allocation5 + $0x10] sm:$0xff] }
  0x6a   : > { %1708 = vsyncadd (%p2082_p8), [#allocation6], 4294966272  ;;  %1468 = vmatprep.subr.bf16.mxu0 %v1734_v0  ;;  %1405 = vmatprep.mubr.msk.f32.mxu0 %vm1735_vm0, %v1736_v1  ;;  %v1469_v5 = vpack.c.bf16 %v217_v3, %v216_v2  ;;  %v219_v6 = vld [vmem:[#allocation5 + $0x18] sm:$0xff]  ;;  %vm224_vm1 = vcmask 261120   ;;  %vm298_vm2 = vcmask 64512   ;;  %s1737_s18 = smov 120  }
  0x6b   : > { %1408 = vmatprep.subr.mxu1 %v1736_v1  ;;  %1410 = vmatprep.mubr.msk.f32.mxu1 %vm1735_vm0, %v1736_v1  ;;  %v1472_v7 = vpack.c.bf16 %v219_v6, %v218_v4  ;;  %v215_v8 = vld [vmem:[%s184_s22] sm:$0xff]  ;;  %s1738_s20 = smov 112   ;;  %v221_v39 = vld [vmem:[#allocation7 + $0x8] sm:$0xff]  ;;  %v220_v40 = vld [vmem:[#allocation7] sm:$0xff]  ;;  %s1739_s17 = smov 104  }
  0x6c   : > { %1470 = vmatpush3.bf16.msra.mxu0 %v1469_v5  ;;  %v222_v52 = vld [vmem:[#allocation7 + $0x10] sm:$0xff]  ;;  %s1365_s24 = sshll.u32 %s1782_s16, 7  ;;  %s214_s26 = scalar_lea.vmem [#allocation8], %s1343_s21 }
  0x6d   : > { %1471 = vmatprep.subr.bf16.mxu0 %v1734_v0  ;;  %s1246_s27 = sshll.u32 %s214_s26, 4  ;;  %s2021_s23 = scalar_lea.hbm %s2069_s3, %s1365_s24  ;;  %s2023_s27 = int_to_ptr.vmem [resolvable:$true] %s1246_s27 }
  0x6e   : > { %s1233_s5 = scalar_lea.sflag [#allocation4], %s1930_s8  ;;  %s1657_s10 = scalar_lea.vmem %s2023_s27, 128 }
  0x6f   : > { %p1658_p11 = scmp.ne.s32.totalorder %s2023_s27, %s1657_s10  ;;  %p2083_p0 = scmp.ne.s32.totalorder %s2078_s6, 0 }
  0x70   : > { %1473 = vmatpush3.bf16.msra.mxu0 %v1472_v7  ;;  %s1740_s16 = smov [#allocation8]  }
  0x71   : > { %1428 = vmatprep.subr.mxu0 %v1736_v1  ;;  %p1659_p1 = pnand %p1658_p11, %p2083_p0  ;;  %s1661_s11 = sshll.u32 %s1740_s16, 4  ;;  %s1662_s11 = int_to_ptr.vmem [resolvable:$false] %s1661_s11 }
  0x72   : > { %s1663_s25 = scalar_lea.vmem %s1662_s11, 256  ;;  %p1664_p7 = scmp.lt.s32.totalorder %s2023_s27, %s1662_s11 }
  0x73   : > { %1406 = vmatmul.mubr.msk.f32.vlgmr.msra.gmra.mrb[0].mxu0 %vm224_vm1, %v215_v8  ;;  %v223_v8 = vld [vmem:[#allocation7 + $0x18] sm:$0xff]  ;;  %p1660_p3 = pneg %p1659_p1  ;;  %p1665_p9 = scmp.lt.s32.totalorder %s1663_s25, %s1657_s10 }
  0x74   : > { %1430 = vmatprep.mubr.msk.f32.mxu0 %vm1735_vm0, %v1736_v1  ;;  %1429 = vmatpush3.msra.mxu0 %v221_v39 }
  0x75   : > { %1433 = vmatprep.subr.mxu0 %v1736_v1  ;;  %p1666_p12 = por %p1665_p9, %p1664_p7 }
  0x77   : > { %p1667_p2 = pnand %p1666_p12, %p1660_p3 }
 0x146   : > { %v1953_v9 = vpop.f32.mrb[0].mxu0 }
 0x147   : > { %457 = vrot.lane.b32.xlu1 %v1953_v9, %s1737_s18  ;;  %v1407_v10 = vpop.f32.mrb[1].mxu0  ;;  %1409 = vmatpush3.xpose.msk.msra.mxu1 %vm298_vm2, %v1953_v9 }
 0x148   : > { %1413 = vmatprep.subr.mxu1 %v1736_v1 }
 0x14a   : > { %1411 = vmatmul.mubr.msk.f32.vlgmr.msra.gmra.mrb[0].mxu1 %vm298_vm2, %v1953_v9 }
 0x14b   : > { %1414 = vmatpush3.msra.mxu1 %v1953_v9  ;;  %1415 = vmatprep.mubr.msk.f32.mxu1 %vm1735_vm0, %v1736_v1 }
 0x14c   : > { %1418 = vmatprep.subr.mxu1 %v1736_v1 }
 0x1b9   : > { %v458_v23 = vpop.permute.xlu1 %457 }
 0x21d   : > { %v368_v11 = vpop.f32.mrb[0].mxu1 }
 0x21e   : > { %v372_v12 = vmul.f32 0.35355338, %v368_v11  ;;  %v1412_v13 = vpop.f32.mrb[1].mxu1 }
 0x220   : > { %v373_v14 = vsel %vm298_vm2, %v372_v12, -inf }
 0x221   : > { %374 = vmax.xlane.f32.xlu0 %v373_v14 }
 0x2ae   : > { %v375_v15 = vpop.xlane.xlu0 %374 }
 0x2af   : > { %v376_v16 = vsub.f32 %v372_v12, %v375_v15 }
 0x2b1   : > { %v377_v17 = vmul.f32 1.442695, %v376_v16 }
 0x2b3   : > { %1555 = vpow2.f32 %v377_v17 }
 0x2bd   : > { %v1556_v18 = vpop.eup %1555 }
 0x2be   : > { %v379_v19 = vsel %vm298_vm2, %v1556_v18, 0.0 }
 0x2bf   : > { %380 = vadd.xlane.f32.xlu0 %v379_v19 }
 0x34c   : > { %v381_v20 = vpop.xlane.xlu0 %380 }
 0x34d   : > { %1557 = vrcp.f32 %v381_v20 }
 0x357   : > { %v1558_v21 = vpop.eup %1557 }
 0x358   : > { %v383_v22 = vmul.f32 %v1558_v21, %v1556_v18 }
 0x35a   : > { %1416 = vmatmul.mubr.msk.f32.vlgmr.msra.gmra.mrb[2].mxu1 %vm298_vm2, %v383_v22 }
 0x35b   : > { %1419 = vmatpush3.xpose.msk.msra.mxu1 %vm298_vm2, %v458_v23  ;;  %1420 = vmatprep.mubr.msk.f32.mxu1 %vm1735_vm0, %v1736_v1 }
 0x35c   : > { %1423 = vmatprep.subr.mxu1 %v1736_v1 }
 0x35e   : > { %1421 = vmatmul.mubr.msk.f32.vlgmr.msra.gmra.mrb[4].mxu1 %vm298_vm2, %v458_v23 }
 0x35f   : > { %1424 = vmatpush3.msra.mxu1 %v458_v23  ;;  %1425 = vmatprep.mubr.msk.f32.mxu1 %vm1735_vm0, %v1736_v1 }
 0x360   : > { %1438 = vmatprep.subr.mxu1 %v1736_v1 }
 0x42d   : > { %v453_v24 = vpop.f32.mrb[2].mxu1 }
 0x42e   : > { %v1417_v25 = vpop.f32.mrb[3].mxu1 }
 0x431   : > { %v527_v26 = vpop.f32.mrb[4].mxu1 }
 0x432   : > { %v531_v27 = vmul.f32 0.35355338, %v527_v26  ;;  %v1422_v28 = vpop.f32.mrb[5].mxu1 }
 0x434   : > { %v532_v29 = vsel %vm298_vm2, %v531_v27, -inf }
 0x435   : > { %533 = vmax.xlane.f32.xlu1 %v532_v29 }
 0x4c2   : > { %v534_v30 = vpop.xlane.xlu1 %533 }
 0x4c3   : > { %v535_v31 = vsub.f32 %v531_v27, %v534_v30 }
 0x4c5   : > { %v536_v32 = vmul.f32 1.442695, %v535_v31 }
 0x4c7   : > { %1559 = vpow2.f32 %v536_v32 }
 0x4d1   : > { %v1560_v33 = vpop.eup %1559 }
 0x4d2   : > { %v538_v34 = vsel %vm298_vm2, %v1560_v33, 0.0 }
 0x4d3   : > { %539 = vadd.xlane.f32.xlu0 %v538_v34 }
 0x4e9   : > { %763 = vrot.lane.b32.xlu0 %v1953_v9, %s1738_s20 }
 0x560   : > { %v540_v35 = vpop.xlane.xlu0 %539 }
 0x561   : > { %1561 = vrcp.f32 %v540_v35 }
 0x564   : > { %v764_v38 = vpop.permute.xlu0 %763 }
 0x56b   : > { %v1562_v36 = vpop.eup %1561 }
 0x56c   : > { %v542_v37 = vmul.f32 %v1562_v36, %v1560_v33 }
 0x56e   : > { %1426 = vmatmul.mubr.msk.f32.vlgmr.msra.gmra.mrb[6].mxu1 %vm298_vm2, %v542_v37 }
 0x56f   : > { %1439 = vmatpush3.xpose.msk.msra.mxu1 %vm298_vm2, %v764_v38  ;;  %1440 = vmatprep.mubr.msk.f32.mxu1 %vm1735_vm0, %v1736_v1 }
 0x570   : > { %1443 = vmatprep.subr.mxu1 %v1736_v1 }
 0x572   : > { %1441 = vmatmul.mubr.msk.f32.vlgmr.msra.gmra.mrb[8].mxu1 %vm298_vm2, %v764_v38 }
 0x573   : > { %1444 = vmatpush3.msra.mxu1 %v764_v38  ;;  %1445 = vmatprep.mubr.msk.f32.mxu1 %vm1735_vm0, %v1736_v1 }
 0x574   : > { %1453 = vmatprep.subr.mxu1 %v1736_v1 }
 0x641   : > { %v613_v41 = vpop.f32.mrb[6].mxu1 }
 0x642   : > { %v1427_v42 = vpop.f32.mrb[7].mxu1  ;;  %1431 = vmatmul.mubr.msk.f32.vlgmr.msra.gmra.mrb[2].mxu0 %vm298_vm2, %v613_v41 }
 0x643   : > { %1434 = vmatpush3.msra.mxu0 %v220_v40  ;;  %1435 = vmatprep.mubr.msk.f32.mxu0 %vm1735_vm0, %v1736_v1 }
 0x644   : > { %1448 = vmatprep.subr.mxu0 %v1736_v1 }
 0x645   : > { %v833_v43 = vpop.f32.mrb[8].mxu1 }
 0x646   : > { %v837_v44 = vmul.f32 0.35355338, %v833_v43  ;;  %v1442_v45 = vpop.f32.mrb[9].mxu1 }
 0x648   : > { %v838_v46 = vsel %vm298_vm2, %v837_v44, -inf }
 0x649   : > { %839 = vmax.xlane.f32.xlu0 %v838_v46 }
 0x64a   : > { %1436 = vmatmul.mubr.msk.f32.vlgmr.msra.gmra.mrb[2].mxu0 %vm298_vm2, %v453_v24 }
 0x64b   : > { %1450 = vmatprep.mubr.msk.f32.mxu0 %vm1735_vm0, %v1736_v1  ;;  %1449 = vmatpush3.msra.mxu0 %v222_v52 }
 0x64c   : > { %1458 = vmatprep.subr.mxu0 %v1736_v1 }
 0x6d6   : > { %v840_v47 = vpop.xlane.xlu0 %839 }
 0x6d7   : > { %v841_v48 = vsub.f32 %v837_v44, %v840_v47 }
 0x6d9   : > { %v842_v49 = vmul.f32 1.442695, %v841_v48 }
 0x6db   : > { %1563 = vpow2.f32 %v842_v49 }
 0x6e5   : > { %v1564_v50 = vpop.eup %1563 }
 0x6e6   : > { %v844_v51 = vsel %vm298_vm2, %v1564_v50, 0.0 }
 0x6e7   : > { %845 = vadd.xlane.f32.xlu1 %v844_v51 }
 0x6f8   : > { %997 = vrot.lane.b32.xlu1 %v1953_v9, %s1739_s17 }
 0x774   : > { %v846_v53 = vpop.xlane.xlu1 %845 }
 0x775   : > { %1565 = vrcp.f32 %v846_v53 }
 0x778   : > { %v998_v56 = vpop.permute.xlu1 %997 }
 0x77f   : > { %v1566_v54 = vpop.eup %1565 }
 0x780   : > { %v848_v55 = vmul.f32 %v1566_v54, %v1564_v50 }
 0x782   : > { %1446 = vmatmul.mubr.msk.f32.vlgmr.msra.gmra.mrb[10].mxu1 %vm298_vm2, %v848_v55 }
 0x783   : > { %1454 = vmatpush3.xpose.msk.msra.mxu1 %vm298_vm2, %v998_v56  ;;  %1455 = vmatprep.mubr.msk.f32.mxu1 %vm1735_vm0, %v1736_v1 }
 0x786   : > { %1456 = vmatmul.mubr.msk.f32.vlgmr.msra.gmra.mrb[12].mxu1 %vm298_vm2, %v998_v56 }
 0x855   : > { %v919_v57 = vpop.f32.mrb[10].mxu1 }
 0x856   : > { %v1447_v58 = vpop.f32.mrb[11].mxu1  ;;  %1451 = vmatmul.mubr.msk.f32.vlgmr.msra.gmra.mrb[2].mxu0 %vm298_vm2, %v919_v57 }
 0x857   : > { %1459 = vmatpush3.msra.mxu0 %v998_v56  ;;  %1460 = vmatprep.mubr.msk.f32.mxu0 %vm1735_vm0, %v1736_v1 }
 0x858   : > { %1463 = vmatprep.subr.mxu0 %v1736_v1 }
 0x859   : > { %v1067_v59 = vpop.f32.mrb[12].mxu1 }
 0x85a   : > { %v1071_v60 = vmul.f32 0.35355338, %v1067_v59  ;;  %v1457_v61 = vpop.f32.mrb[13].mxu1 }
 0x85c   : > { %v1072_v62 = vsel %vm298_vm2, %v1071_v60, -inf }
 0x85d   : > { %1073 = vmax.xlane.f32.xlu1 %v1072_v62 }
 0x8ea   : > { %v1074_v63 = vpop.xlane.xlu1 %1073 }
 0x8eb   : > { %v1075_v0 = vsub.f32 %v1071_v60, %v1074_v63 }
 0x8ed   : > { %v1076_v2 = vmul.f32 1.442695, %v1075_v0 }
 0x8ef   : > { %1567 = vpow2.f32 %v1076_v2 }
 0x8f9   : > { %v1568_v3 = vpop.eup %1567 }
 0x8fa   : > { %v1078_v4 = vsel %vm298_vm2, %v1568_v3, 0.0 }
 0x8fb   : > { %1079 = vadd.xlane.f32.xlu0 %v1078_v4 }
 0x988   : > { %v1080_v5 = vpop.xlane.xlu0 %1079 }
 0x989   : > { %1569 = vrcp.f32 %v1080_v5 }
 0x993   : > { %v1570_v6 = vpop.eup %1569 }
 0x994   : > { %v1082_v7 = vmul.f32 %v1570_v6, %v1568_v3 }
 0x996   : > { %1461 = vmatmul.mubr.msk.f32.vlgmr.msra.gmra.mrb[4].mxu0 %vm298_vm2, %v1082_v7 }
 0x997   : > { %1464 = vmatpush3.msra.mxu0 %v223_v8  ;;  %1465 = vmatprep.mubr.msk.f32.mxu0 %vm1735_vm0, %v1736_v1 }
 0xa69   : > { %v1153_v9 = vpop.f32.mrb[4].mxu0 }
 0xa6a   : > { %v1462_v10 = vpop.f32.mrb[5].mxu0  ;;  %1466 = vmatmul.mubr.msk.f32.vlgmr.msra.gmra.mrb[2].mxu0 %vm298_vm2, %v1153_v9 }
 0xb3d   : > { %v1226_v11 = vpop.f32.mrb[2].mxu0 }
 0xb3e   : > { %1231 = vst.msk [vmem:[%s214_s26] sm:$0xff] %vm224_vm1, %v1226_v11  ;;  %v1467_v1 = vpop.f32.mrb[3].mxu0 }
 0xb3f   : > { %1670 = shalt.err (!%p1667_p2)
}
 0xb40   : > { %s1671_s7 = scalar_lea.hbm %s2021_s23, 128  ;;  %s1675_s28 = scalar_lea.hbm %s2069_s3, 256 }
 0xb41   : > { %p1672_p13 = scmp.ne.s32.totalorder %s2021_s23, %s1671_s7  ;;  %p1676_p4 = scmp.lt.u32.totalorder %s2021_s23, %s2069_s3 }
 0xb42   : > { %p1677_p5 = scmp.lt.u32.totalorder %s1675_s28, %s1671_s7  ;;  %p1679_p11 = scmp.lt.u32.totalorder %s1671_s7, %s2021_s23 }
 0xb43   : > { %p1673_p6 = pnand %p1672_p13, %p2083_p0 }
 0xb44   : > { %p1678_p8 = por %p1677_p5, %p1676_p4 }
 0xb45   : > { %p1674_p10 = pneg %p1673_p6 }
 0xb46   : > { %p1680_p1 = por %p1679_p11, %p1678_p8 }
 0xb48   : > { %p1681_p3 = pnand %p1680_p1, %p1674_p10 }
 0xb4a   : > { %1684 = shalt.err (!%p1681_p3)
}
 0xb4b   : > { %1490 = dma.vmem_to_hbm [thread:$0]  (%p2083_p0), %s2023_s27, 128, %s2021_s23, %s1233_s5  }
 0xb4c PF: > { %s1258_s20 = sand.u32 1, %s1715_s12   ;;  %p2084_p7 = scmp.ne.s32.totalorder %s2074_s19, 0 }
 0xb4d   : > { %p2085_p9 = scmp.ge.s32.totalorder %s1727_s15, 2  ;;  %s1259_s17 = scalar_lea.sflag [#allocation4], %s1258_s20 }
 0xb4f   : > { %p1504_p12 = pnand %p2085_p9, %p2084_p7 }
 0xb51   : > { %1710 = dma.done.wait (!%p1504_p12), %s1259_s17, 128  }
 0xb52   : > { %1712 = vsyncadd (!%p1504_p12), %s1259_s17, 4294967168  ;;  %p17_p2 = scmp.ge.s32.totalorder %s1871_s4, 4   ;;  %s2086_s12 = smov %s1719_s13 }
 0xb53   : > { %s2087_s13 = smov %s1723_s14  ;;  %s2088_s14 = smov %s1887_s9 }
 0xb54   : > { %s2089_s15 = smov %s1871_s4  ;;  %19 = sbr.rel (!%p17_p2) target bundleno = 6 (0x6), region = 85 }
 0xb5b   :  { %1264 = vsyncpa [#allocation3], 1 }
 0xb5c   :  { %1266 = vsyncpa [#allocation3 + $0x1], 1 }
 0xb5d   :  { %1267 = vsyncpa [#allocation6], 1 }
 0xb5e   :  { %1268 = vsyncpa [#allocation4], 1 }
 0xb5f   :  { %1270 = vsyncpa [#allocation4 + $0x1], 1 }

</bundles_post_ra>
